<compile_context>
chip_gen: v6e
topology: v6e:2x2x1
jax: 0.10.0
libtpu: 0.0.40
codegen_flags: <defaults>
</compile_context>

<pallas_src>
import math
import functools

import jax
import jax.numpy as jnp
from jax.experimental import pallas as pl
from jax.experimental.pallas import tpu as pltpu

# ---- L0 regularizer hyper-parameters (module defaults) ----------------------
LAM           = 1.0
WEIGHT_DECAY  = 0.0
TEMPERATURE   = 2.0 / 3.0
DROPRATE_INIT = 0.2
LIMIT_A       = -0.1
LIMIT_B       = 1.1
EPSILON       = 1e-6

_SCALE    = LIMIT_B - LIMIT_A
_INV_TEMP = 1.0 / TEMPERATURE

# Largest default tiles double-buffered stay well under this; 48 MiB is below the
# 64 MiB/TC physical VMEM of v7x and trivially safe on v5e/v6e (128 MiB).
_VMEM_LIMIT_BYTES = 48 * 1024 * 1024


def _round_up(a, m):
    return (a + m - 1) // m * m


def _pad2(a, r, c):
    return jnp.pad(a, ((0, r - a.shape[0]), (0, c - a.shape[1])))


def _hard_concrete_gate(u, log_alpha):
    """hardtanh(sigmoid((u+log_alpha)/T)*(limit_b-limit_a)+limit_a, 0, 1).

    sigmoid(a) computed as 0.5*(tanh(0.5*a)+1): a single EUP push per element
    instead of exp + divide (the EUP has one VLIW slot).
    """
    a = (u + log_alpha) * _INV_TEMP
    s = 0.5 * (jnp.tanh(0.5 * a) + 1.0)
    return jnp.clip(s * _SCALE + LIMIT_A, 0.0, 1.0)


# =============================================================================
# Kernels
# =============================================================================
def _gate_weights_kernel(w_ref, mw_ref, uw_ref, wm_ref):
    """Elementwise prologue: W_masked = hard_concrete(u_w, mask_w) * W (once)."""
    zw = _hard_concrete_gate(uw_ref[...], mw_ref[...])
    wm_ref[...] = (zw * w_ref[...]).astype(wm_ref.dtype)


def _l0_matmul_kernel(x_ref, wm_ref, b_ref, o_ref):
    """One (i, j, k) step of y = x @ W_masked.T + b_gated.

    x_ref  : (tm, tk)  input tile (compute dtype)
    wm_ref : (tn, tk)  pre-gated weight tile (compute dtype, PyTorch (OUT, IN))
    b_ref  : (1, tn)   pre-gated bias tile (f32)
    o_ref  : (tm, tn)  f32 output tile; block index is k-invariant, so it stays
                       VMEM-resident and doubles as the accumulator.
    """
    k = pl.program_id(2)

    @pl.when(k == 0)
    def _init():
        o_ref[...] = jnp.zeros_like(o_ref)

    # Contract the shared IN axis of x (tm,tk) and wm (tn,tk): x @ wm.T with no
    # materialized transpose; f32 accumulation on the MXU.
    o_ref[...] += jax.lax.dot_general(
        x_ref[...], wm_ref[...],
        dimension_numbers=(((1,), (1,)), ((), ())),
        preferred_element_type=jnp.float32)

    @pl.when(k == pl.num_programs(2) - 1)
    def _finalize():
        o_ref[...] += b_ref[...]


def _l0_fused_kernel(x_ref, w_ref, mw_ref, uw_ref, b_ref, o_ref):
    """Fused variant (gate computed on the fly). Used only when gi == 1, where
    each weight tile is visited exactly once so there is no redundant gating."""
    k = pl.program_id(2)

    @pl.when(k == 0)
    def _init():
        o_ref[...] = jnp.zeros_like(o_ref)

    zw = _hard_concrete_gate(uw_ref[...], mw_ref[...])          # f32 gate math
    wm = (zw * w_ref[...]).astype(x_ref.dtype)                  # cast for the MXU
    o_ref[...] += jax.lax.dot_general(
        x_ref[...], wm,
        dimension_numbers=(((1,), (1,)), ((), ())),
        preferred_element_type=jnp.float32)

    @pl.when(k == pl.num_programs(2) - 1)
    def _finalize():
        o_ref[...] += b_ref[...]


# =============================================================================
# Wrappers
# =============================================================================
def _tile_sizes(B, IN, OUT, tm, tn, tk, sub):
    # Larger batch tiles raise arithmetic intensity on the weight stream and fill
    # the 256-wide MXU on v6e/v7x; sub = 8 (f32) / 16 (bf16) sublane packing.
    if tm is None:
        tm = min(256, _round_up(B, sub))
    tm = _round_up(tm, sub)
    if tn is None:
        tn = min(512, _round_up(OUT, 128))
        # v7x has 2 TensorCores: with a single batch tile (gi == 1) prefer an even
        # parallel j-extent so both cores get work.
        if _round_up(B, tm) // tm == 1 and tn > 128:
            half = tn // 2
            if pl.cdiv(OUT, tn) % 2 == 1 and half % 128 == 0 and pl.cdiv(OUT, half) % 2 == 0:
                tn = half
    if tk is None:
        tk = min(1024, _round_up(IN, 128))
    return tm, tn, tk


def _gate_weights(wp, mwp, uwp, out_dtype, tn, tk):
    """One-shot gating prologue over the padded (OUTp, INp) weight array."""
    OUTp, INp = wp.shape
    spec = pl.BlockSpec((tn, tk), lambda j, k: (j, k))
    cost = pl.CostEstimate(
        flops=4 * OUTp * INp,
        transcendentals=OUTp * INp,
        bytes_accessed=3 * OUTp * INp * 4 + OUTp * INp * jnp.dtype(out_dtype).itemsize)
    return pl.pallas_call(
        _gate_weights_kernel,
        out_shape=jax.ShapeDtypeStruct((OUTp, INp), out_dtype),
        grid=(OUTp // tn, INp // tk),
        in_specs=[spec, spec, spec],
        out_specs=spec,
        compiler_params=pltpu.CompilerParams(
            dimension_semantics=("parallel", "parallel"),
            vmem_limit_bytes=_VMEM_LIMIT_BYTES),
        cost_estimate=cost,
    )(wp, mwp, uwp)


@functools.partial(jax.jit, static_argnames=("use_bf16", "tm", "tn", "tk"))
def l0_linear_forward(x, w, mask_w, u_w, b, mask_b, u_b, *,
                      use_bf16=False, tm=None, tn=None, tk=None):
    """L0-gated Linear forward (training mode), concrete noise supplied as arrays."""
    B, IN = x.shape
    OUT = w.shape[0]
    compute_dtype = jnp.bfloat16 if use_bf16 else jnp.float32
    itemsize = 2 if use_bf16 else 4

    tm, tn, tk = _tile_sizes(B, IN, OUT, tm, tn, tk, sub=16 if use_bf16 else 8)
    Bp, OUTp, INp = _round_up(B, tm), _round_up(OUT, tn), _round_up(IN, tk)
    gi, gj, gk = Bp // tm, OUTp // tn, INp // tk

    # Bias gate folded host-side: O(OUT) work; removes 3 small DMA streams and the
    # finalize-time sigmoid from the kernel.
    zb = jnp.clip(jax.nn.sigmoid((u_b + mask_b) * _INV_TEMP) * _SCALE + LIMIT_A,
                  0.0, 1.0)
    bg = _pad2((zb * b).astype(jnp.float32), 1, OUTp)

    xp = _pad2(x, Bp, INp).astype(compute_dtype)

    x_spec = pl.BlockSpec((tm, tk), lambda i, j, k: (i, k))
    w_spec = pl.BlockSpec((tn, tk), lambda i, j, k: (j, k))
    b_spec = pl.BlockSpec((1, tn), lambda i, j, k: (0, j))
    o_spec = pl.BlockSpec((tm, tn), lambda i, j, k: (i, j))
    cparams = pltpu.CompilerParams(
        dimension_semantics=("parallel", "parallel", "arbitrary"),
        vmem_limit_bytes=_VMEM_LIMIT_BYTES)

    if gi == 1:
        # Single batch tile: fully fused (one pass over w / mask_w / u_w).
        wp, mwp, uwp = (_pad2(w, OUTp, INp), _pad2(mask_w, OUTp, INp),
                        _pad2(u_w, OUTp, INp))
        cost = pl.CostEstimate(
            flops=2 * Bp * INp * OUTp + 4 * OUTp * INp,
            transcendentals=OUTp * INp,
            bytes_accessed=(gj * Bp * INp * itemsize      # x re-streamed per j-tile
                            + 3 * OUTp * INp * 4          # w, mask_w, u_w (f32)
                            + OUTp * 4 + Bp * OUTp * 4))
        out = pl.pallas_call(
            _l0_fused_kernel,
            out_shape=jax.ShapeDtypeStruct((Bp, OUTp), jnp.float32),
            grid=(gi, gj, gk),
            in_specs=[x_spec, w_spec, w_spec, w_spec, b_spec],
            out_specs=o_spec,
            compiler_params=cparams,
            cost_estimate=cost,
        )(xp, wp, mwp, uwp, bg)
    else:
        # gi > 1: gate once (prologue), then the matmul streams a single
        # (optionally bf16) W_masked array instead of 3 f32 streams per batch tile.
        wm = _gate_weights(_pad2(w, OUTp, INp), _pad2(mask_w, OUTp, INp),
                           _pad2(u_w, OUTp, INp), compute_dtype, tn, tk)
        cost = pl.CostEstimate(
            flops=2 * Bp * INp * OUTp,
            transcendentals=0,
            bytes_accessed=(gj * Bp * INp * itemsize      # x re-streamed per j-tile
                            + gi * OUTp * INp * itemsize  # W_masked per batch tile
                            + gi * OUTp * 4 + Bp * OUTp * 4))
        # TODO(synk): if DMA is still exposed at large shapes, sweep
        # pipeline_mode=pl.Buffered(3) on w_spec (budget against v7x 64 MiB VMEM).
        out = pl.pallas_call(
            _l0_matmul_kernel,
            out_shape=jax.ShapeDtypeStruct((Bp, OUTp), jnp.float32),
            grid=(gi, gj, gk),
            in_specs=[x_spec, w_spec, b_spec],
            out_specs=o_spec,
            compiler_params=cparams,
            cost_estimate=cost,
        )(xp, wm, bg)

    return out[:B, :OUT]


# =============================================================================
# Host-side helpers / reference
# =============================================================================
def _concrete_noise(key, shape):
    """u = log(eps) - log(1-eps), eps ~ U(epsilon, 1-epsilon)  (get_eps semantics)."""
    eps = jax.random.uniform(key, shape, jnp.float32) * (1.0 - 2.0 * EPSILON) + EPSILON
    return jnp.log(eps) - jnp.log1p(-eps)


def reference_forward(x, w, mask_w, u_w, b, mask_b, u_b):
    """Pure-JAX reference of the training-mode L0 forward for a Linear module."""
    zw = jnp.clip(jax.nn.sigmoid((u_w + mask_w) / TEMPERATURE) * _SCALE + LIMIT_A,
                  0.0, 1.0)
    zb = jnp.clip(jax.nn.sigmoid((u_b + mask_b) / TEMPERATURE) * _SCALE + LIMIT_A,
                  0.0, 1.0)
    return x @ (zw * w).T + zb * b


if __name__ == "__main__":
    # Small shapes; non-multiples of the tiles so padding, multi-tile reduction,
    # the pl.when init/finalize paths, both the fused and the prologue paths, and
    # the bf16 path are all exercised.
    B_SMALL, B_LARGE, IN, OUT = 10, 48, 300, 200

    key = jax.random.PRNGKey(0)
    k_x1, k_x2, k_w, k_mw, k_mb, k_uw, k_ub = jax.random.split(key, 7)

    # ---- deterministic parameter init (reset_parameters semantics) ----------
    bound = math.sqrt(6.0 / (IN + OUT))                       # xavier_uniform_
    w = jax.random.uniform(k_w, (OUT, IN), jnp.float32, -bound, bound)
    b = jnp.zeros((1, OUT), jnp.float32)                      # bias init = 0
    mask_mean = math.log(1.0 - DROPRATE_INIT) - math.log(DROPRATE_INIT)
    mask_w = mask_mean + 0.01 * jax.random.normal(k_mw, (OUT, IN), jnp.float32)
    mask_b = mask_mean + 0.01 * jax.random.normal(k_mb, (1, OUT), jnp.float32)

    # concrete noise (training-mode sampling, host-side like torch.rand/get_eps)
    u_w = _concrete_noise(k_uw, (OUT, IN))
    u_b = _concrete_noise(k_ub, (1, OUT))

    x1 = jax.random.normal(k_x1, (B_SMALL, IN), jnp.float32)
    x2 = jax.random.normal(k_x2, (B_LARGE, IN), jnp.float32)

    # 1) fused single-batch-tile path, f32, default tiles (exercises even-j logic)
    y1 = jax.block_until_ready(l0_linear_forward(x1, w, mask_w, u_w, b, mask_b, u_b))
    r1 = reference_forward(x1, w, mask_w, u_w, b, mask_b, u_b)
    assert y1.shape == (B_SMALL, OUT)
    assert bool(jnp.allclose(y1, r1, atol=2e-2, rtol=2e-2)), "fused f32 path mismatch"

    # 2) prologue (gate-once) path, f32, multi-tile reduction + padding
    y2 = jax.block_until_ready(
        l0_linear_forward(x2, w, mask_w, u_w, b, mask_b, u_b, tm=16, tn=128, tk=128))
    r2 = reference_forward(x2, w, mask_w, u_w, b, mask_b, u_b)
    assert y2.shape == (B_LARGE, OUT)
    assert bool(jnp.allclose(y2, r2, atol=2e-2, rtol=2e-2)), "prologue f32 path mismatch"

    # 3) prologue path with bf16 gated-weight storage / bf16 MXU operands
    y3 = jax.block_until_ready(
        l0_linear_forward(x2, w, mask_w, u_w, b, mask_b, u_b,
                          use_bf16=True, tm=16, tn=128, tk=128))
    assert y3.shape == (B_LARGE, OUT)
    assert bool(jnp.all(jnp.isfinite(y3)))
    assert bool(jnp.allclose(y3, r2, atol=1e-1, rtol=5e-2)), "bf16 path mismatch"

    # TODO(synk): regularization()/count_l0()/count_l2() penalties are not part of
    # forward(); they would be a separate small reduction kernel over mask_w/mask_b.
    # TODO(synk): in-kernel HW-PRNG noise (pltpu.prng_seed) was dropped because it
    # does not lower in the CPU-interpret harness; noise is sampled host-side.
    print("KERNEL_OK")
</pallas_src>

<mosaic_0001>
module attributes {stable_mosaic.version = 11 : i64} {
  func.func @_l0_fused_kernel(%arg0: i32, %arg1: i32, %arg2: i32, %arg3: memref<16x384xf32, #tpu.memory_space<vmem>>, %arg4: memref<128x384xf32, #tpu.memory_space<vmem>>, %arg5: memref<128x384xf32, #tpu.memory_space<vmem>>, %arg6: memref<128x384xf32, #tpu.memory_space<vmem>>, %arg7: memref<1x128xf32, #tpu.memory_space<vmem>>, %arg8: memref<16x128xf32, #tpu.memory_space<vmem>>) attributes {dimension_semantics = [#tpu.dimension_semantics<parallel>, #tpu.dimension_semantics<parallel>, #tpu.dimension_semantics<arbitrary>], iteration_bounds = array<i64: 1, 2, 1>, scalar_prefetch = 0 : i64, scratch_operands = 0 : i64, tpu.core_type = #tpu.core_type<tc>, window_params = [{transform_indices = @transform_0, window_bounds = array<i64: 16, 384>}, {transform_indices = @transform_1, window_bounds = array<i64: 128, 384>}, {transform_indices = @transform_2, window_bounds = array<i64: 128, 384>}, {transform_indices = @transform_3, window_bounds = array<i64: 128, 384>}, {transform_indices = @transform_4, window_bounds = array<i64: 1, 128>}, {transform_indices = @transform_5, window_bounds = array<i64: 16, 128>}]} {
    %c0_i32 = arith.constant 0 : i32
    %0 = arith.cmpi eq, %arg2, %c0_i32 : i32
    %1 = arith.extui %0 : i1 to i32
    %c0_i32_0 = arith.constant 0 : i32
    %2 = arith.cmpi ne, %1, %c0_i32_0 : i32
    scf.if %2 {
      %cst_22 = arith.constant 0.000000e+00 : f32
      %33 = vector.broadcast %cst_22 : f32 to vector<16x128xf32>
      %c0_23 = arith.constant 0 : index
      %c0_24 = arith.constant 0 : index
      %34 = vector.load %arg8[%c0_23, %c0_24] : memref<16x128xf32, #tpu.memory_space<vmem>>, vector<16x128xf32>
      tpu.vector_store %arg8[%c0_23, %c0_24], %33 {strides = array<i32>} : memref<16x128xf32, #tpu.memory_space<vmem>>, vector<16x128xf32>,
    } else {
    }
    %c0 = arith.constant 0 : index
    %c0_1 = arith.constant 0 : index
    %3 = vector.load %arg6[%c0, %c0_1] : memref<128x384xf32, #tpu.memory_space<vmem>>, vector<128x384xf32>
    %c0_2 = arith.constant 0 : index
    %c0_3 = arith.constant 0 : index
    %4 = vector.load %arg5[%c0_2, %c0_3] : memref<128x384xf32, #tpu.memory_space<vmem>>, vector<128x384xf32>
    %5 = arith.addf %3, %4 : vector<128x384xf32>
    %cst = arith.constant 1.500000e+00 : f32
    %6 = vector.broadcast %cst : f32 to vector<128x384xf32>
    %7 = arith.mulf %5, %6 : vector<128x384xf32>
    %cst_4 = arith.constant 5.000000e-01 : f32
    %8 = vector.broadcast %cst_4 : f32 to vector<128x384xf32>
    %9 = arith.mulf %8, %7 : vector<128x384xf32>
    %10 = math.tanh %9 : vector<128x384xf32>
    %cst_5 = arith.constant 1.000000e+00 : f32
    %11 = vector.broadcast %cst_5 : f32 to vector<128x384xf32>
    %12 = arith.addf %10, %11 : vector<128x384xf32>
    %cst_6 = arith.constant 5.000000e-01 : f32
    %13 = vector.broadcast %cst_6 : f32 to vector<128x384xf32>
    %14 = arith.mulf %13, %12 : vector<128x384xf32>
    %cst_7 = arith.constant 1.200000e+00 : f32
    %15 = vector.broadcast %cst_7 : f32 to vector<128x384xf32>
    %16 = arith.mulf %14, %15 : vector<128x384xf32>
    %cst_8 = arith.constant -1.000000e-01 : f32
    %17 = vector.broadcast %cst_8 : f32 to vector<128x384xf32>
    %18 = arith.addf %16, %17 : vector<128x384xf32>
    %cst_9 = arith.constant 0.000000e+00 : f32
    %cst_10 = arith.constant 1.000000e+00 : f32
    %19 = vector.broadcast %cst_9 : f32 to vector<128x384xf32>
    %20 = arith.maximumf %19, %18 : vector<128x384xf32>
    %21 = vector.broadcast %cst_10 : f32 to vector<128x384xf32>
    %22 = arith.minimumf %21, %20 : vector<128x384xf32>
    %c0_11 = arith.constant 0 : index
    %c0_12 = arith.constant 0 : index
    %23 = vector.load %arg4[%c0_11, %c0_12] : memref<128x384xf32, #tpu.memory_space<vmem>>, vector<128x384xf32>
    %24 = arith.mulf %22, %23 : vector<128x384xf32>
    %c0_13 = arith.constant 0 : index
    %c0_14 = arith.constant 0 : index
    %25 = vector.load %arg8[%c0_13, %c0_14] : memref<16x128xf32, #tpu.memory_space<vmem>>, vector<16x128xf32>
    %c0_15 = arith.constant 0 : index
    %c0_16 = arith.constant 0 : index
    %26 = vector.load %arg3[%c0_15, %c0_16] : memref<16x384xf32, #tpu.memory_space<vmem>>, vector<16x384xf32>
    %cst_17 = arith.constant dense<0.000000e+00> : vector<16x128xf32>
    %27 = tpu.matmul %26, %24, %cst_17 {dimension_numbers = #tpu.dot_dimension_numbers<[1], [1], [0], [0], [0, 0, 1, 0], [], []>} : vector<16x384xf32>, vector<128x384xf32>, vector<16x128xf32> -> vector<16x128xf32>
    %28 = arith.addf %25, %27 : vector<16x128xf32>
    %c0_18 = arith.constant 0 : index
    %c0_19 = arith.constant 0 : index
    %29 = vector.load %arg8[%c0_18, %c0_19] : memref<16x128xf32, #tpu.memory_space<vmem>>, vector<16x128xf32>
    tpu.vector_store %arg8[%c0_18, %c0_19], %28 {strides = array<i32>} : memref<16x128xf32, #tpu.memory_space<vmem>>, vector<16x128xf32>,
    %c0_i32_20 = arith.constant 0 : i32
    %30 = arith.cmpi eq, %arg2, %c0_i32_20 : i32
    %31 = arith.extui %30 : i1 to i32
    %c0_i32_21 = arith.constant 0 : i32
    %32 = arith.cmpi ne, %31, %c0_i32_21 : i32
    scf.if %32 {
      %c0_22 = arith.constant 0 : index
      %c0_23 = arith.constant 0 : index
      %33 = vector.load %arg8[%c0_22, %c0_23] : memref<16x128xf32, #tpu.memory_space<vmem>>, vector<16x128xf32>
      %c0_24 = arith.constant 0 : index
      %c0_25 = arith.constant 0 : index
      %34 = vector.load %arg7[%c0_24, %c0_25] : memref<1x128xf32, #tpu.memory_space<vmem>>, vector<1x128xf32>
      %35 = vector.broadcast %34 : vector<1x128xf32> to vector<16x128xf32>
      %36 = arith.addf %33, %35 : vector<16x128xf32>
      %c0_26 = arith.constant 0 : index
      %c0_27 = arith.constant 0 : index
      %37 = vector.load %arg8[%c0_26, %c0_27] : memref<16x128xf32, #tpu.memory_space<vmem>>, vector<16x128xf32>
      tpu.vector_store %arg8[%c0_26, %c0_27], %36 {strides = array<i32>} : memref<16x128xf32, #tpu.memory_space<vmem>>, vector<16x128xf32>,
    } else {
    }
    return
  }
  func.func @transform_0(%arg0: i32, %arg1: i32, %arg2: i32) -> (i32, i32) {
    %c0_i32 = arith.constant 0 : i32
    return %arg0, %arg2 : i32, i32
  }
  func.func @transform_1(%arg0: i32, %arg1: i32, %arg2: i32) -> (i32, i32) {
    %c0_i32 = arith.constant 0 : i32
    return %arg1, %arg2 : i32, i32
  }
  func.func @transform_2(%arg0: i32, %arg1: i32, %arg2: i32) -> (i32, i32) {
    %c0_i32 = arith.constant 0 : i32
    return %arg1, %arg2 : i32, i32
  }
  func.func @transform_3(%arg0: i32, %arg1: i32, %arg2: i32) -> (i32, i32) {
    %c0_i32 = arith.constant 0 : i32
    return %arg1, %arg2 : i32, i32
  }
  func.func @transform_4(%arg0: i32, %arg1: i32, %arg2: i32) -> (i32, i32) {
    %c0_i32 = arith.constant 0 : i32
    %c0_i32_0 = arith.constant 0 : i32
    return %c0_i32, %arg1 : i32, i32
  }
  func.func @transform_5(%arg0: i32, %arg1: i32, %arg2: i32) -> (i32, i32) {
    %c0_i32 = arith.constant 0 : i32
    return %arg0, %arg1 : i32, i32
  }
}

</mosaic_0001>

<bundles_post_ra>
// kernel: l0_linear_forward.1
= control target key start
LH: loop header
LB: loop body
LE: loop exit
PB: predicated region body
PF: predicated region fallthrough
CT: control target
= control target key end

     0   :  { %10 = vsyncpa [#allocation3], 0  ;;  %s2076_s0 = inlined_call_operand.vmem [shape: f32[16,384], index: 0, kind: input, shape index: {}]   ;;  %s2077_s1 = inlined_call_operand.vmem [shape: f32[256,384], index: 1, kind: input, shape index: {}]   ;;  %s2078_s2 = inlined_call_operand.vmem [shape: f32[256,384], index: 2, kind: input, shape index: {}]   ;;  %s2079_s3 = inlined_call_operand.vmem [shape: f32[256,384], index: 3, kind: input, shape index: {}]   ;;  %s2080_s4 = inlined_call_operand.vmem [shape: f32[1,256], index: 4, kind: input, shape index: {}]   ;;  %s2081_s5 = inlined_call_operand.hbm [shape: f32[16,256], index: 5, kind: output, shape index: {}]  }
   0x1   :  { %12 = vsyncpa [#allocation3 + $0x1], 0  ;;  %s1761_s18 = smov 0   ;;  %s1763_s19 = smov 0  }
   0x2   :  { %s1765_s20 = smov 0   ;;  %s1767_s21 = smov 0  }
   0x3   :  { %s1769_s22 = smov 0   ;;  %s1771_s23 = smov 0  }
   0x4 LB: > { %s1422_s24 = sadd.s32 4294967295, %s1725_s23   ;;  %s1423_s25 = sadd.s32 4294967294, %s1725_s23   ;;  %s1725_s23 = sphi %s1771_s23, %s18_s23   ;;  %s1721_s22 = sphi %s1769_s22, %s2088_s22   ;;  %s1717_s21 = sphi %s1767_s21, %s2087_s21   ;;  %s1713_s20 = sphi %s1765_s20, %s2086_s20   ;;  %s1709_s19 = sphi %s1763_s19, %s2085_s19   ;;  %s1705_s18 = sphi %s1761_s18, %s2084_s18  }
   0x5   : > { %s33_s26 = sadd.s32 1, %s1721_s22  ;;  %s184_s27 = sadd.s32 1, %s1713_s20 }
   0x6   : > { %p35_p0 = scmp.ge.s32.totalorder %s33_s26, 2  ;;  %p194_p1 = scmp.ne.s32.totalorder %s1713_s20, %s1709_s19 }
   0x7   : > { %p195_p2 = scmp.eq.s32.totalorder %s1422_s24, 1  ;;  %p200_p3 = scmp.ne.s32.totalorder %s1709_s19, %s1705_s18 }
   0x8   : > { %s2090_s26 = smov (%p35_p0, %s33_s26), 0  ;;  %p201_p5 = scmp.eq.s32.totalorder %s1423_s25, 1 }
   0x9   : > { %p1801_p4 = por %p195_p2, %p194_p1  ;;  %s180_s29 = ssub.s32 %s1721_s22, %s2090_s26 }
   0xa   : > { %p1427_p6 = scmp.ge.s32.totalorder %s1725_s23, 1  ;;  %p182_p7 = scmp.eq.s32.totalorder %s180_s29, 0 }
   0xb   : > { %p1808_p8 = por %p201_p5, %p200_p3  ;;  %p285_p9 = scmp.lt.s32.totalorder %s1725_s23, 3 }
   0xc   : > { %s1814_s6 = scalar_select %p182_p7, %s1713_s20, %s184_s27  }
   0xd   : > { %p286_p10 = pnand %p1427_p6, %p285_p9 }
   0xe   : > { %s1429_s7 = sshll.u32 (!%p286_p10), %s1717_s21, 4  ;;  %p399_p12 = scmp.lt.s32.totalorder (!%p286_p10), %s1717_s21, 1 }
   0xf   : > { %289 = sbr.rel (%p286_p10) target bundleno = 396 (0x18c), region = 40  ;;  %p365_p11 = scmp.lt.s32.totalorder (!%p286_p10), %s1429_s7, 31 }
  0x10   : > { %s348_s16 = sand.u32 (!%p286_p10), 1, %s1709_s19   ;;  %s1437_s29 = sshll.u32 (!%p286_p10), %s1717_s21, 7 }
  0x11   : > { %s2031_s12 = scalar_lea.sflag (!%p286_p10), [#allocation3], %s348_s16  ;;  %s1727_s13 = smov (!%p286_p10), [#allocation2]  }
  0x14   : > { %s2092_s7 = smov (!%p365_p11, %s1429_s7), 31 }
  0x15   : > { %s1817_s8 = smul.u32 24, %s2092_s7 }
  0x16   : > { %s400_s15 = scalar_select %p399_p12, %s1717_s21, 1 }
  0x17   : > { %s1823_s11 = scalar_lea.vmem %s2078_s2, %s1817_s8  ;;  %s1829_s14 = scalar_lea.vmem %s2079_s3, %s1817_s8 }
  0x18   : > { %v503_v0 = vld [vmem:[%s1823_s11 + $0x170] sm:$0xff]  ;;  %v504_v1 = vld [vmem:[%s1823_s11 + $0x178] sm:$0xff]  ;;  %v454_v6 = vld [vmem:[%s1829_s14 + $0x168] sm:$0xff]  ;;  %s1879_s17 = scalar_lea.vmem %s2077_s1, %s1817_s8  ;;  %s401_s27 = scalar_lea.vmem %s2080_s4, %s400_s15 }
  0x19   : > { %v455_v2 = vld [vmem:[%s1829_s14 + $0x170] sm:$0xff]  ;;  %v456_v3 = vld [vmem:[%s1829_s14 + $0x178] sm:$0xff]  ;;  %v502_v7 = vld [vmem:[%s1823_s11 + $0x168] sm:$0xff] }
  0x1a   : > { %v551_v4 = vadd.f32 %v503_v0, %v455_v2  ;;  %v552_v5 = vadd.f32 %v504_v1, %v456_v3  ;;  %v550_v8 = vadd.f32 %v502_v7, %v454_v6  ;;  %v452_v9 = vld [vmem:[%s1829_s14 + $0x158] sm:$0xff]  ;;  %v453_v14 = vld [vmem:[%s1829_s14 + $0x160] sm:$0xff]  ;;  %v451_v18 = vld [vmem:[%s1829_s14 + $0x150] sm:$0xff] }
  0x1b   : > { %v500_v10 = vld [vmem:[%s1823_s11 + $0x158] sm:$0xff]  ;;  %v501_v15 = vld [vmem:[%s1823_s11 + $0x160] sm:$0xff]  ;;  %v499_v19 = vld [vmem:[%s1823_s11 + $0x150] sm:$0xff] }
  0x1c   : > { %v599_v11 = vmul.f32 1.5, %v551_v4  ;;  %v600_v12 = vmul.f32 1.5, %v552_v5  ;;  %v548_v13 = vadd.f32 %v500_v10, %v452_v9  ;;  %v598_v16 = vmul.f32 1.5, %v550_v8  ;;  %v449_v24 = vld [vmem:[%s1829_s14 + $0x140] sm:$0xff]  ;;  %v450_v29 = vld [vmem:[%s1829_s14 + $0x148] sm:$0xff]  ;;  %v448_v34 = vld [vmem:[%s1829_s14 + $0x138] sm:$0xff] }
  0x1d   : > { %v549_v17 = vadd.f32 %v501_v15, %v453_v14  ;;  %v547_v23 = vadd.f32 %v499_v19, %v451_v18  ;;  %v497_v25 = vld [vmem:[%s1823_s11 + $0x140] sm:$0xff]  ;;  %v498_v30 = vld [vmem:[%s1823_s11 + $0x148] sm:$0xff]  ;;  %v496_v35 = vld [vmem:[%s1823_s11 + $0x138] sm:$0xff] }
  0x1e   : > { %v647_v20 = vmul.f32 0.5, %v599_v11  ;;  %v648_v21 = vmul.f32 0.5, %v600_v12  ;;  %v596_v22 = vmul.f32 1.5, %v548_v13  ;;  %v646_v26 = vmul.f32 0.5, %v598_v16  ;;  %v446_v39 = vld [vmem:[%s1829_s14 + $0x128] sm:$0xff]  ;;  %v447_v44 = vld [vmem:[%s1829_s14 + $0x130] sm:$0xff] }
  0x1f   : > { %v597_v27 = vmul.f32 1.5, %v549_v17  ;;  %v545_v28 = vadd.f32 %v497_v25, %v449_v24  ;;  %v595_v32 = vmul.f32 1.5, %v547_v23  ;;  %v546_v33 = vadd.f32 %v498_v30, %v450_v29  ;;  %v494_v40 = vld [vmem:[%s1823_s11 + $0x128] sm:$0xff]  ;;  %v495_v45 = vld [vmem:[%s1823_s11 + $0x130] sm:$0xff]  ;;  %v445_v49 = vld [vmem:[%s1829_s14 + $0x120] sm:$0xff] }
  0x20   : > { %1553 = vtanh.f32 %v647_v20  ;;  %v644_v31 = vmul.f32 0.5, %v596_v22  ;;  %v544_v38 = vadd.f32 %v496_v35, %v448_v34  ;;  %v542_v43 = vadd.f32 %v494_v40, %v446_v39  ;;  %v493_v50 = vld [vmem:[%s1823_s11 + $0x120] sm:$0xff]  ;;  %v443_v54 = vld [vmem:[%s1829_s14 + $0x110] sm:$0xff]  ;;  %v444_v59 = vld [vmem:[%s1829_s14 + $0x118] sm:$0xff] }
  0x21   : > { %1555 = vtanh.f32 %v648_v21  ;;  %v645_v36 = vmul.f32 0.5, %v597_v27  ;;  %v593_v37 = vmul.f32 1.5, %v545_v28  ;;  %v643_v41 = vmul.f32 0.5, %v595_v32  ;;  %v491_v55 = vld [vmem:[%s1823_s11 + $0x110] sm:$0xff]  ;;  %v492_v60 = vld [vmem:[%s1823_s11 + $0x118] sm:$0xff]  ;;  %v442_v0 = vld [vmem:[%s1829_s14 + $0x108] sm:$0xff] }
  0x22   : > { %1557 = vtanh.f32 %v646_v26  ;;  %v594_v42 = vmul.f32 1.5, %v546_v33  ;;  %v592_v47 = vmul.f32 1.5, %v544_v38  ;;  %v543_v48 = vadd.f32 %v495_v45, %v447_v44  ;;  %v490_v1 = vld [vmem:[%s1823_s11 + $0x108] sm:$0xff]  ;;  %v440_v5 = vld [vmem:[%s1829_s14 + $0xf8] sm:$0xff]  ;;  %v441_v10 = vld [vmem:[%s1829_s14 + $0x100] sm:$0xff] }
  0x23   : > { %1559 = vtanh.f32 %v644_v31  ;;  %v641_v46 = vmul.f32 0.5, %v593_v37  ;;  %v590_v52 = vmul.f32 1.5, %v542_v43  ;;  %v541_v53 = vadd.f32 %v493_v50, %v445_v49  ;;  %v488_v6 = vld [vmem:[%s1823_s11 + $0xf8] sm:$0xff]  ;;  %v489_v11 = vld [vmem:[%s1823_s11 + $0x100] sm:$0xff]  ;;  %v439_v15 = vld [vmem:[%s1829_s14 + $0xf0] sm:$0xff] }
  0x24   : > { %1561 = vtanh.f32 %v645_v36  ;;  %v642_v51 = vmul.f32 0.5, %v594_v42  ;;  %v640_v56 = vmul.f32 0.5, %v592_v47  ;;  %v591_v57 = vmul.f32 1.5, %v543_v48  ;;  %v487_v16 = vld [vmem:[%s1823_s11 + $0xf0] sm:$0xff]  ;;  %v437_v20 = vld [vmem:[%s1829_s14 + $0xe0] sm:$0xff]  ;;  %v438_v25 = vld [vmem:[%s1829_s14 + $0xe8] sm:$0xff] }
  0x25   : > { %1563 = vtanh.f32 %v643_v41  ;;  %v539_v58 = vadd.f32 %v491_v55, %v443_v54  ;;  %v638_v61 = vmul.f32 0.5, %v590_v52  ;;  %v589_v62 = vmul.f32 1.5, %v541_v53  ;;  %v485_v21 = vld [vmem:[%s1823_s11 + $0xe0] sm:$0xff]  ;;  %v486_v26 = vld [vmem:[%s1823_s11 + $0xe8] sm:$0xff]  ;;  %v436_v30 = vld [vmem:[%s1829_s14 + $0xd8] sm:$0xff] }
  0x26   : > { %1565 = vtanh.f32 %v641_v46  ;;  %v540_v63 = vadd.f32 %v492_v60, %v444_v59  ;;  %v639_v2 = vmul.f32 0.5, %v591_v57  ;;  %v538_v4 = vadd.f32 %v490_v1, %v442_v0  ;;  %v484_v31 = vld [vmem:[%s1823_s11 + $0xd8] sm:$0xff] }
  0x27   : > { %1567 = vtanh.f32 %v642_v51  ;;  %v587_v3 = vmul.f32 1.5, %v539_v58  ;;  %v637_v7 = vmul.f32 0.5, %v589_v62  ;;  %v536_v9 = vadd.f32 %v488_v6, %v440_v5 }
  0x28   : > { %1569 = vtanh.f32 %v640_v56  ;;  %v588_v8 = vmul.f32 1.5, %v540_v63  ;;  %v586_v13 = vmul.f32 1.5, %v538_v4  ;;  %v537_v14 = vadd.f32 %v489_v11, %v441_v10 }
  0x29   : > { %1571 = vtanh.f32 %v638_v61  ;;  %v635_v12 = vmul.f32 0.5, %v587_v3  ;;  %v584_v18 = vmul.f32 1.5, %v536_v9  ;;  %v535_v19 = vadd.f32 %v487_v16, %v439_v15  ;;  %v1032_v9 = vld [vmem:[%s1879_s17 + $0x178] sm:$0xff]  ;;  %v1030_v15 = vld [vmem:[%s1879_s17 + $0x168] sm:$0xff] }
  0x2a   : > { %1573 = vtanh.f32 %v639_v2  ;;  %v636_v17 = vmul.f32 0.5, %v588_v8  ;;  %v634_v22 = vmul.f32 0.5, %v586_v13  ;;  %v585_v23 = vmul.f32 1.5, %v537_v14  ;;  %v1031_v2 = vld [vmem:[%s1879_s17 + $0x170] sm:$0xff] }
  0x2b   : > { %1575 = vtanh.f32 %v637_v7  ;;  %v533_v24 = vadd.f32 %v485_v21, %v437_v20  ;;  %v632_v27 = vmul.f32 0.5, %v584_v18  ;;  %v583_v28 = vmul.f32 1.5, %v535_v19 }
  0x2c   : > { %1577 = vtanh.f32 %v635_v12  ;;  %v534_v29 = vadd.f32 %v486_v26, %v438_v25  ;;  %v633_v33 = vmul.f32 0.5, %v585_v23  ;;  %v532_v35 = vadd.f32 %v484_v31, %v436_v30 }
  0x2d   : > { %v1554_v32 = vpop.eup %1553  ;;  %1579 = vtanh.f32 %v636_v17  ;;  %v581_v34 = vmul.f32 1.5, %v533_v24  ;;  %v631_v38 = vmul.f32 0.5, %v583_v28 }
  0x2e   : > { %v1556_v36 = vpop.eup %1555  ;;  %v743_v37 = vadd.f32 1.0, %v1554_v32  ;;  %1581 = vtanh.f32 %v634_v22  ;;  %v582_v39 = vmul.f32 1.5, %v534_v29  ;;  %v580_v43 = vmul.f32 1.5, %v532_v35  ;;  %v1028_v32 = vld [vmem:[%s1879_s17 + $0x158] sm:$0xff] }
  0x2f   : > { %v1558_v40 = vpop.eup %1557  ;;  %v744_v41 = vadd.f32 1.0, %v1556_v36  ;;  %1583 = vtanh.f32 %v632_v27  ;;  %v629_v42 = vmul.f32 0.5, %v581_v34 }
  0x30   : > { %v1560_v44 = vpop.eup %1559  ;;  %v791_v45 = vmul.f32 0.5, %v743_v37  ;;  %v742_v46 = vadd.f32 1.0, %v1558_v40  ;;  %1585 = vtanh.f32 %v633_v33  ;;  %v630_v47 = vmul.f32 0.5, %v582_v39 }
  0x31   : > { %v1562_v48 = vpop.eup %1561  ;;  %v792_v49 = vmul.f32 0.5, %v744_v41  ;;  %v740_v50 = vadd.f32 1.0, %v1560_v44  ;;  %1587 = vtanh.f32 %v631_v38  ;;  %v1873_v51 = vmul.f32 0.5, %v580_v43  ;;  %v1029_v38 = vld [vmem:[%s1879_s17 + $0x160] sm:$0xff]  ;;  %v1027_v44 = vld [vmem:[%s1879_s17 + $0x150] sm:$0xff] }
  0x32   : > { %v1564_v52 = vpop.eup %1563  ;;  %v839_v53 = vmul.f32 1.2, %v791_v45  ;;  %v790_v54 = vmul.f32 0.5, %v742_v46  ;;  %v741_v55 = vadd.f32 1.0, %v1562_v48  ;;  %1589 = vtanh.f32 %v629_v42 }
  0x33   : > { %v1566_v56 = vpop.eup %1565  ;;  %v840_v57 = vmul.f32 1.2, %v792_v49  ;;  %v788_v58 = vmul.f32 0.5, %v740_v50  ;;  %v739_v59 = vadd.f32 1.0, %v1564_v52  ;;  %1591 = vtanh.f32 %v630_v47  ;;  %v1025_v50 = vld [vmem:[%s1879_s17 + $0x140] sm:$0xff] }
  0x34   : > { %v1568_v60 = vpop.eup %1567  ;;  %v887_v61 = vadd.f32 -0.1, %v839_v53  ;;  %v838_v62 = vmul.f32 1.2, %v790_v54  ;;  %v789_v63 = vmul.f32 0.5, %v741_v55  ;;  %v737_v0 = vadd.f32 1.0, %v1566_v56 }
  0x35   : > { %v1570_v1 = vpop.eup %1569  ;;  %v888_v3 = vadd.f32 -0.1, %v840_v57  ;;  %v836_v4 = vmul.f32 1.2, %v788_v58  ;;  %v787_v5 = vmul.f32 0.5, %v739_v59  ;;  %v738_v6 = vadd.f32 1.0, %v1568_v60 }
  0x36   : > { %v1572_v7 = vpop.eup %1571  ;;  %v935_v8 = vmax.f32 %v887_v61, 0.0  ;;  %v886_v10 = vadd.f32 -0.1, %v838_v62  ;;  %v837_v11 = vmul.f32 1.2, %v789_v63  ;;  %v785_v12 = vmul.f32 0.5, %v737_v0 }
  0x37   : > { %v1574_v13 = vpop.eup %1573  ;;  %v936_v14 = vmax.f32 %v888_v3, 0.0  ;;  %v884_v16 = vadd.f32 -0.1, %v836_v4  ;;  %v835_v17 = vmul.f32 1.2, %v787_v5  ;;  %v786_v18 = vmul.f32 0.5, %v738_v6 }
  0x38   : > { %v1576_v19 = vpop.eup %1575  ;;  %v983_v20 = vmin.f32 %v935_v8, 1.0  ;;  %v934_v21 = vmax.f32 %v886_v10, 0.0  ;;  %v885_v22 = vadd.f32 -0.1, %v837_v11  ;;  %v833_v23 = vmul.f32 1.2, %v785_v12 }
  0x39   : > { %v1578_v24 = vpop.eup %1577  ;;  %v984_v25 = vmin.f32 %v936_v14, 1.0  ;;  %v932_v26 = vmax.f32 %v884_v16, 0.0  ;;  %v883_v27 = vadd.f32 -0.1, %v835_v17  ;;  %v834_v28 = vmul.f32 1.2, %v786_v18 }
  0x3a   : > { %v1580_v29 = vpop.eup %1579  ;;  %v1079_v30 = vmul.f32 %v1031_v2, %v983_v20  ;;  %v982_v31 = vmin.f32 %v934_v21, 1.0  ;;  %v933_v33 = vmax.f32 %v885_v22, 0.0  ;;  %v881_v34 = vadd.f32 -0.1, %v833_v23  ;;  %v1026_v57 = vld [vmem:[%s1879_s17 + $0x148] sm:$0xff]  ;;  %v1024_v14 = vld [vmem:[%s1879_s17 + $0x138] sm:$0xff] }
  0x3b   : > { %v1582_v35 = vpop.eup %1581  ;;  %v1080_v36 = vmul.f32 %v1032_v9, %v984_v25  ;;  %v980_v37 = vmin.f32 %v932_v26, 1.0  ;;  %v931_v39 = vmax.f32 %v883_v27, 0.0  ;;  %v882_v40 = vadd.f32 -0.1, %v834_v28  ;;  %v1022_v20 = vld [vmem:[%s1879_s17 + $0x128] sm:$0xff]  ;;  %v1023_v25 = vld [vmem:[%s1879_s17 + $0x130] sm:$0xff] }
  0x3c   : > { %v1584_v41 = vpop.eup %1583  ;;  %1089 = vmatprep.subr.mxu0 %v1079_v30  ;;  %v1078_v42 = vmul.f32 %v1030_v15, %v982_v31  ;;  %v981_v43 = vmin.f32 %v933_v33, 1.0  ;;  %v929_v45 = vmax.f32 %v881_v34, 0.0  ;;  %v736_v46 = vadd.f32 1.0, %v1570_v1 }
  0x3d   : > { %v1887_v47 = vpop.eup %1585  ;;  %1458 = vmatprep.subr.mxu1 %v1080_v36  ;;  %v1076_v48 = vmul.f32 %v1028_v32, %v980_v37  ;;  %v979_v49 = vmin.f32 %v931_v39, 1.0  ;;  %v930_v52 = vmax.f32 %v882_v40, 0.0  ;;  %v734_v53 = vadd.f32 1.0, %v1572_v7  ;;  %v1021_v39 = vld [vmem:[%s1879_s17 + $0x120] sm:$0xff] }
  0x3e   : > { %v1890_v54 = vpop.eup %1587  ;;  %1090 = vmatpush1.xpose.msra.mxu0 %v1078_v42  ;;  %1459 = vmatpush3.xpose.msra.mxu1 %v1080_v36  ;;  %v1077_v55 = vmul.f32 %v1029_v38, %v981_v43  ;;  %v977_v56 = vmin.f32 %v929_v45, 1.0  ;;  %v784_v58 = vmul.f32 0.5, %v736_v46  ;;  %v735_v59 = vadd.f32 1.0, %v1574_v13 }
  0x3f   : > { %v1893_v60 = vpop.eup %1589  ;;  %1091 = vmatprep.subr.mxu0 %v1076_v48  ;;  %v1075_v61 = vmul.f32 %v1027_v44, %v979_v49  ;;  %v978_v62 = vmin.f32 %v930_v52, 1.0  ;;  %v782_v63 = vmul.f32 0.5, %v734_v53  ;;  %v733_v0 = vadd.f32 1.0, %v1576_v19  ;;  %v1019_v44 = vld [vmem:[%s1879_s17 + $0x110] sm:$0xff] }
  0x40   : > { %v1895_v1 = vpop.eup %1591  ;;  %1460 = vmatprep.subr.mxu1 %v1077_v55  ;;  %v1073_v2 = vmul.f32 %v1025_v50, %v977_v56  ;;  %v832_v3 = vmul.f32 1.2, %v784_v58  ;;  %v783_v4 = vmul.f32 0.5, %v735_v59  ;;  %v731_v5 = vadd.f32 1.0, %v1578_v24  ;;  %v1020_v50 = vld [vmem:[%s1879_s17 + $0x118] sm:$0xff] }
  0x41   : > { %v1074_v6 = vmul.f32 %v1026_v57, %v978_v62  ;;  %v830_v7 = vmul.f32 1.2, %v782_v63  ;;  %v781_v8 = vmul.f32 0.5, %v733_v0  ;;  %v732_v9 = vadd.f32 1.0, %v1580_v29  ;;  %v1018_v57 = vld [vmem:[%s1879_s17 + $0x108] sm:$0xff]  ;;  %v1016_v59 = vld [vmem:[%s1879_s17 + $0xf8] sm:$0xff] }
  0x42   : > { %1092 = vmatpush1.xpose.msra.mxu0 %v1075_v61  ;;  %1461 = vmatpush3.xpose.msra.mxu1 %v1077_v55  ;;  %v880_v10 = vadd.f32 -0.1, %v832_v3  ;;  %v831_v11 = vmul.f32 1.2, %v783_v4  ;;  %v779_v12 = vmul.f32 0.5, %v731_v5  ;;  %v730_v13 = vadd.f32 1.0, %v1582_v35 }
  0x43   : > { %1093 = vmatprep.subr.mxu0 %v1073_v2  ;;  %1462 = vmatprep.subr.mxu1 %v1074_v6  ;;  %v878_v15 = vadd.f32 -0.1, %v830_v7  ;;  %v829_v16 = vmul.f32 1.2, %v781_v8  ;;  %v780_v17 = vmul.f32 0.5, %v732_v9  ;;  %v728_v18 = vadd.f32 1.0, %v1584_v41 }
  0x44   : > { %v928_v19 = vmax.f32 %v880_v10, 0.0  ;;  %v879_v21 = vadd.f32 -0.1, %v831_v11  ;;  %v827_v22 = vmul.f32 1.2, %v779_v12  ;;  %v778_v23 = vmul.f32 0.5, %v730_v13 }
  0x45   : > { %v926_v24 = vmax.f32 %v878_v15, 0.0  ;;  %v877_v26 = vadd.f32 -0.1, %v829_v16  ;;  %v828_v27 = vmul.f32 1.2, %v780_v17  ;;  %v776_v28 = vmul.f32 0.5, %v728_v18 }
  0x46   : > { %v976_v29 = vmin.f32 %v928_v19, 1.0  ;;  %1463 = vmatpush3.xpose.msra.mxu1 %v1074_v6  ;;  %v927_v30 = vmax.f32 %v879_v21, 0.0  ;;  %v875_v31 = vadd.f32 -0.1, %v827_v22  ;;  %v826_v32 = vmul.f32 1.2, %v778_v23 }
  0x47   : > { %v974_v33 = vmin.f32 %v926_v24, 1.0  ;;  %v925_v34 = vmax.f32 %v877_v26, 0.0  ;;  %v876_v35 = vadd.f32 -0.1, %v828_v27  ;;  %v824_v36 = vmul.f32 1.2, %v776_v28 }
  0x48   : > { %v1072_v37 = vmul.f32 %v1024_v14, %v976_v29  ;;  %v975_v38 = vmin.f32 %v927_v30, 1.0  ;;  %v923_v40 = vmax.f32 %v875_v31, 0.0  ;;  %v874_v41 = vadd.f32 -0.1, %v826_v32  ;;  %v434_v3 = vld [vmem:[%s1829_s14 + $0xc8] sm:$0xff]  ;;  %v435_v4 = vld [vmem:[%s1829_s14 + $0xd0] sm:$0xff] }
  0x49   : > { %v1070_v42 = vmul.f32 %v1022_v20, %v974_v33  ;;  %v973_v43 = vmin.f32 %v925_v34, 1.0  ;;  %v924_v45 = vmax.f32 %v876_v35, 0.0  ;;  %v872_v46 = vadd.f32 -0.1, %v824_v36  ;;  %v483_v9 = vld [vmem:[%s1823_s11 + $0xd0] sm:$0xff]  ;;  %v481_v10 = vld [vmem:[%s1823_s11 + $0xc0] sm:$0xff] }
  0x4a   : > { %1094 = vmatpush1.xpose.msra.mxu0 %v1072_v37  ;;  %v1071_v48 = vmul.f32 %v1023_v25, %v975_v38  ;;  %v971_v49 = vmin.f32 %v923_v40, 1.0  ;;  %v922_v52 = vmax.f32 %v874_v41, 0.0  ;;  %v729_v53 = vadd.f32 1.0, %v1887_v47  ;;  %v482_v47 = vld [vmem:[%s1823_s11 + $0xc8] sm:$0xff]  ;;  %v479_v14 = vld [vmem:[%s1823_s11 + $0xb0] sm:$0xff]  ;;  %v1017_v22 = vld [vmem:[%s1879_s17 + $0x100] sm:$0xff] }
  0x4b   : > { %1095 = vmatprep.subr.mxu0 %v1070_v42  ;;  %v1069_v55 = vmul.f32 %v1021_v39, %v973_v43  ;;  %v972_v56 = vmin.f32 %v924_v45, 1.0  ;;  %v920_v58 = vmax.f32 %v872_v46, 0.0  ;;  %v727_v61 = vadd.f32 1.0, %v1890_v54  ;;  %v433_v54 = vld [vmem:[%s1829_s14 + $0xc0] sm:$0xff]  ;;  %v432_v26 = vld [vmem:[%s1829_s14 + $0xb8] sm:$0xff]  ;;  %v1015_v28 = vld [vmem:[%s1879_s17 + $0xf0] sm:$0xff] }
  0x4c   : > { %1464 = vmatprep.subr.mxu1 %v1071_v48  ;;  %v1067_v62 = vmul.f32 %v1019_v44, %v971_v49  ;;  %v970_v63 = vmin.f32 %v922_v52, 1.0  ;;  %v777_v0 = vmul.f32 0.5, %v729_v53  ;;  %v725_v2 = vadd.f32 1.0, %v1893_v60  ;;  %v431_v60 = vld [vmem:[%s1829_s14 + $0xb0] sm:$0xff]  ;;  %v480_v32 = vld [vmem:[%s1823_s11 + $0xb8] sm:$0xff]  ;;  %v1013_v34 = vld [vmem:[%s1879_s17 + $0xe0] sm:$0xff] }
  0x4d   : > { %1465 = vmatpush3.xpose.msra.mxu1 %v1071_v48  ;;  %v1068_v5 = vmul.f32 %v1020_v50, %v972_v56  ;;  %v968_v6 = vmin.f32 %v920_v58, 1.0  ;;  %v775_v7 = vmul.f32 0.5, %v727_v61  ;;  %v726_v8 = vadd.f32 1.0, %v1895_v1  ;;  %v430_v38 = vld [vmem:[%s1829_s14 + $0xa8] sm:$0xff]  ;;  %v428_v45 = vld [vmem:[%s1829_s14 + $0x98] sm:$0xff]  ;;  %v429_v52 = vld [vmem:[%s1829_s14 + $0xa0] sm:$0xff] }
  0x4e   : > { %1096 = vmatpush1.xpose.msra.mxu0 %v1069_v55  ;;  %v1066_v11 = vmul.f32 %v1018_v57, %v970_v63  ;;  %v825_v12 = vmul.f32 1.2, %v777_v0  ;;  %v773_v13 = vmul.f32 0.5, %v725_v2  ;;  %1593 = vtanh.f32 %v1873_v51  ;;  %v1014_v41 = vld [vmem:[%s1879_s17 + $0xe8] sm:$0xff]  ;;  %v476_v50 = vld [vmem:[%s1823_s11 + $0x98] sm:$0xff]  ;;  %v477_v53 = vld [vmem:[%s1823_s11 + $0xa0] sm:$0xff] }
  0x4f   : > { %1097 = vmatprep.subr.mxu0 %v1067_v62  ;;  %1466 = vmatprep.subr.mxu1 %v1068_v5  ;;  %v1064_v15 = vmul.f32 %v1016_v59, %v968_v6  ;;  %v823_v16 = vmul.f32 1.2, %v775_v7  ;;  %v774_v17 = vmul.f32 0.5, %v726_v8  ;;  %v530_v1 = vadd.f32 %v482_v47, %v434_v3  ;;  %v478_v44 = vld [vmem:[%s1823_s11 + $0xa8] sm:$0xff]  ;;  %v427_v58 = vld [vmem:[%s1829_s14 + $0x90] sm:$0xff]  ;;  %v425_v61 = vld [vmem:[%s1829_s14 + $0x80] sm:$0xff] }
  0x50   : > { %v873_v18 = vadd.f32 -0.1, %v825_v12  ;;  %v821_v19 = vmul.f32 1.2, %v773_v13  ;;  %v531_v20 = vadd.f32 %v483_v9, %v435_v4  ;;  %v529_v21 = vadd.f32 %v481_v10, %v433_v54  ;;  %v475_v59 = vld [vmem:[%s1823_s11 + $0x90] sm:$0xff]  ;;  %v473_v2 = vld [vmem:[%s1823_s11 + $0x80] sm:$0xff] }
  0x51   : > { %1467 = vmatpush3.xpose.msra.mxu1 %v1068_v5  ;;  %v871_v23 = vadd.f32 -0.1, %v823_v16  ;;  %v822_v51 = vmul.f32 1.2, %v774_v17  ;;  %v578_v24 = vmul.f32 1.5, %v530_v1  ;;  %v527_v25 = vadd.f32 %v479_v14, %v431_v60  ;;  %v426_v3 = vld [vmem:[%s1829_s14 + $0x88] sm:$0xff] }
  0x52   : > { %1098 = vmatpush1.xpose.msra.mxu0 %v1066_v11  ;;  %v921_v27 = vmax.f32 %v873_v18, 0.0  ;;  %v869_v29 = vadd.f32 -0.1, %v821_v19  ;;  %v579_v30 = vmul.f32 1.5, %v531_v20  ;;  %v577_v31 = vmul.f32 1.5, %v529_v21  ;;  %v474_v47 = vld [vmem:[%s1823_s11 + $0x88] sm:$0xff] }
  0x53   : > { %1099 = vmatprep.subr.mxu0 %v1064_v15  ;;  %v919_v33 = vmax.f32 %v871_v23, 0.0  ;;  %v870_v35 = vadd.f32 -0.1, %v822_v51  ;;  %v626_v36 = vmul.f32 0.5, %v578_v24  ;;  %v575_v37 = vmul.f32 1.5, %v527_v25  ;;  %v424_v7 = vld [vmem:[%s1829_s14 + $0x78] sm:$0xff] }
  0x54   : > { %v969_v39 = vmin.f32 %v921_v27, 1.0  ;;  %v917_v40 = vmax.f32 %v869_v29, 0.0  ;;  %v627_v42 = vmul.f32 0.5, %v579_v30  ;;  %v625_v43 = vmul.f32 0.5, %v577_v31  ;;  %v472_v8 = vld [vmem:[%s1823_s11 + $0x78] sm:$0xff]  ;;  %v1084_v12 = vld [vmem:[%s2076_s0 + $0x8] sm:$0xff] }
  0x55   : > { %v967_v46 = vmin.f32 %v919_v33, 1.0  ;;  %v918_v48 = vmax.f32 %v870_v35, 0.0  ;;  %1595 = vtanh.f32 %v626_v36  ;;  %v623_v49 = vmul.f32 0.5, %v575_v37  ;;  %v1085_v13 = vld [vmem:[%s2076_s0 + $0x10] sm:$0xff]  ;;  %1153 = vmatprep.mubr.f32.mxu0 %v1084_v12  ;;  %v422_v21 = vld [vmem:[%s1829_s14 + $0x68] sm:$0xff]  ;;  %v421_v30 = vld [vmem:[%s1829_s14 + $0x60] sm:$0xff] }
  0x56   : > { %v1065_v55 = vmul.f32 %v1017_v22, %v969_v39  ;;  %v965_v56 = vmin.f32 %v917_v40, 1.0  ;;  %1597 = vtanh.f32 %v627_v42  ;;  %v528_v57 = vadd.f32 %v480_v32, %v432_v26  ;;  %1490 = vmatprep.mubr.f32.mxu1 %v1085_v13  ;;  %v470_v24 = vld [vmem:[%s1823_s11 + $0x68] sm:$0xff]  ;;  %v423_v25 = vld [vmem:[%s1829_s14 + $0x70] sm:$0xff]  ;;  %v469_v31 = vld [vmem:[%s1823_s11 + $0x60] sm:$0xff] }
  0x57   : > { %v1063_v62 = vmul.f32 %v1015_v28, %v967_v46  ;;  %v966_v63 = vmin.f32 %v918_v48, 1.0  ;;  %1599 = vtanh.f32 %v625_v43  ;;  %v526_v0 = vadd.f32 %v478_v44, %v430_v38  ;;  %v471_v26 = vld [vmem:[%s1823_s11 + $0x70] sm:$0xff]  ;;  %v420_v40 = vld [vmem:[%s1829_s14 + $0x58] sm:$0xff] }
  0x58   : > { %1468 = vmatprep.subr.mxu1 %v1065_v55  ;;  %v1061_v4 = vmul.f32 %v1013_v34, %v965_v56  ;;  %1601 = vtanh.f32 %v623_v49  ;;  %v576_v5 = vmul.f32 1.5, %v528_v57  ;;  %v524_v6 = vadd.f32 %v476_v50, %v428_v45  ;;  %v419_v35 = vld [vmem:[%s1829_s14 + $0x50] sm:$0xff] }
  0x59   : > { %1100 = vmatpush1.xpose.msra.mxu0 %v1063_v62  ;;  %1469 = vmatpush3.xpose.msra.mxu1 %v1065_v55  ;;  %v1062_v9 = vmul.f32 %v1014_v41, %v966_v63  ;;  %v574_v54 = vmul.f32 1.5, %v526_v0  ;;  %v525_v10 = vadd.f32 %v477_v53, %v429_v52  ;;  %v523_v11 = vadd.f32 %v475_v59, %v427_v58  ;;  %v467_v36 = vld [vmem:[%s1823_s11 + $0x50] sm:$0xff]  ;;  %v468_v41 = vld [vmem:[%s1823_s11 + $0x58] sm:$0xff] }
  0x5a   : > { %1101 = vmatprep.subr.mxu0 %v1061_v4  ;;  %v624_v60 = vmul.f32 0.5, %v576_v5  ;;  %v572_v14 = vmul.f32 1.5, %v524_v6  ;;  %v521_v15 = vadd.f32 %v473_v2, %v425_v61  ;;  %v522_v16 = vadd.f32 %v474_v47, %v426_v3  ;;  %v1012_v3 = vld [vmem:[%s1879_s17 + $0xd8] sm:$0xff] }
  0x5b   : > { %v1594_v17 = vpop.eup %1593  ;;  %1470 = vmatprep.subr.mxu1 %v1062_v9  ;;  %v622_v1 = vmul.f32 0.5, %v574_v54  ;;  %v573_v18 = vmul.f32 1.5, %v525_v10  ;;  %v571_v19 = vmul.f32 1.5, %v523_v11  ;;  %v520_v20 = vadd.f32 %v472_v8, %v424_v7  ;;  %v466_v54 = vld [vmem:[%s1823_s11 + $0x48] sm:$0xff] }
  0x5c   : > { %v724_v22 = vadd.f32 1.0, %v1594_v17  ;;  %1603 = vtanh.f32 %v624_v60  ;;  %v620_v23 = vmul.f32 0.5, %v572_v14  ;;  %v569_v51 = vmul.f32 1.5, %v521_v15 }
  0x5d   : > { %1471 = vmatpush3.xpose.msra.mxu1 %v1062_v9  ;;  %1605 = vtanh.f32 %v622_v1  ;;  %v621_v27 = vmul.f32 0.5, %v573_v18  ;;  %v619_v28 = vmul.f32 0.5, %v571_v19  ;;  %v570_v29 = vmul.f32 1.5, %v522_v16  ;;  %v418_v9 = vld [vmem:[%s1829_s14 + $0x48] sm:$0xff] }
  0x5e   : > { %v772_v32 = vmul.f32 0.5, %v724_v22  ;;  %1607 = vtanh.f32 %v620_v23  ;;  %v617_v33 = vmul.f32 0.5, %v569_v51  ;;  %v568_v34 = vmul.f32 1.5, %v520_v20 }
  0x5f   : > { %1609 = vtanh.f32 %v621_v27  ;;  %v618_v37 = vmul.f32 0.5, %v570_v29  ;;  %v518_v38 = vadd.f32 %v470_v24, %v422_v21  ;;  %v519_v39 = vadd.f32 %v471_v26, %v423_v25 }
  0x60   : > { %v820_v42 = vmul.f32 1.2, %v772_v32  ;;  %1611 = vtanh.f32 %v619_v28  ;;  %v616_v43 = vmul.f32 0.5, %v568_v34  ;;  %v517_v44 = vadd.f32 %v469_v31, %v421_v30  ;;  %v1010_v28 = vld [vmem:[%s1879_s17 + $0xc8] sm:$0xff] }
  0x61   : > { %1613 = vtanh.f32 %v617_v33  ;;  %v566_v45 = vmul.f32 1.5, %v518_v38  ;;  %v567_v46 = vmul.f32 1.5, %v519_v39  ;;  %v515_v48 = vadd.f32 %v467_v36, %v419_v35  ;;  %v1011_v35 = vld [vmem:[%s1879_s17 + $0xd0] sm:$0xff] }
  0x62   : > { %v1596_v49 = vpop.eup %1595  ;;  %v868_v50 = vadd.f32 -0.1, %v820_v42  ;;  %1615 = vtanh.f32 %v618_v37  ;;  %v565_v52 = vmul.f32 1.5, %v517_v44  ;;  %v516_v53 = vadd.f32 %v468_v41, %v420_v40  ;;  %v1009_v41 = vld [vmem:[%s1879_s17 + $0xc0] sm:$0xff] }
  0x63   : > { %v1598_v55 = vpop.eup %1597  ;;  %v722_v56 = vadd.f32 1.0, %v1596_v49  ;;  %1617 = vtanh.f32 %v616_v43  ;;  %v614_v57 = vmul.f32 0.5, %v566_v45  ;;  %v615_v58 = vmul.f32 0.5, %v567_v46  ;;  %v1007_v49 = vld [vmem:[%s1879_s17 + $0xb0] sm:$0xff] }
  0x64   : > { %v1600_v59 = vpop.eup %1599  ;;  %v916_v61 = vmax.f32 %v868_v50, 0.0  ;;  %v723_v62 = vadd.f32 1.0, %v1598_v55  ;;  %v613_v63 = vmul.f32 0.5, %v565_v52  ;;  %v563_v0 = vmul.f32 1.5, %v515_v48 }
  0x65   : > { %v1602_v2 = vpop.eup %1601  ;;  %v770_v47 = vmul.f32 0.5, %v722_v56  ;;  %v721_v4 = vadd.f32 1.0, %v1600_v59  ;;  %1619 = vtanh.f32 %v614_v57  ;;  %v564_v5 = vmul.f32 1.5, %v516_v53 }
  0x66   : > { %v964_v6 = vmin.f32 %v916_v61, 1.0  ;;  %v771_v7 = vmul.f32 0.5, %v723_v62  ;;  %v719_v8 = vadd.f32 1.0, %v1602_v2  ;;  %1621 = vtanh.f32 %v615_v58 }
  0x67   : > { %v818_v10 = vmul.f32 1.2, %v770_v47  ;;  %v769_v11 = vmul.f32 0.5, %v721_v4  ;;  %1623 = vtanh.f32 %v613_v63  ;;  %v611_v12 = vmul.f32 0.5, %v563_v0 }
  0x68   : > { %v1060_v13 = vmul.f32 %v1012_v3, %v964_v6  ;;  %v819_v60 = vmul.f32 1.2, %v771_v7  ;;  %v767_v14 = vmul.f32 0.5, %v719_v8  ;;  %v612_v15 = vmul.f32 0.5, %v564_v5  ;;  %v1008_v6 = vld [vmem:[%s1879_s17 + $0xb8] sm:$0xff] }
  0x69   : > { %v1604_v16 = vpop.eup %1603  ;;  %v866_v17 = vadd.f32 -0.1, %v818_v10  ;;  %v817_v1 = vmul.f32 1.2, %v769_v11  ;;  %1625 = vtanh.f32 %v611_v12  ;;  %v514_v18 = vadd.f32 %v466_v54, %v418_v9  ;;  %v1006_v12 = vld [vmem:[%s1879_s17 + $0xa8] sm:$0xff] }
  0x6a   : > { %v1606_v19 = vpop.eup %1605  ;;  %1102 = vmatpush1.xpose.msra.mxu0 %v1060_v13  ;;  %v867_v20 = vadd.f32 -0.1, %v819_v60  ;;  %v815_v21 = vmul.f32 1.2, %v767_v14  ;;  %v720_v22 = vadd.f32 1.0, %v1604_v16  ;;  %1627 = vtanh.f32 %v612_v15  ;;  %v1004_v16 = vld [vmem:[%s1879_s17 + $0x98] sm:$0xff] }
  0x6b   : > { %v1608_v23 = vpop.eup %1607  ;;  %v914_v51 = vmax.f32 %v866_v17, 0.0  ;;  %v865_v24 = vadd.f32 -0.1, %v817_v1  ;;  %v718_v25 = vadd.f32 1.0, %v1606_v19  ;;  %v1957_v26 = vmul.f32 1.5, %v514_v18 }
  0x6c   : > { %v1610_v27 = vpop.eup %1609  ;;  %v915_v29 = vmax.f32 %v867_v20, 0.0  ;;  %v863_v30 = vadd.f32 -0.1, %v815_v21  ;;  %v768_v31 = vmul.f32 0.5, %v720_v22  ;;  %v716_v32 = vadd.f32 1.0, %v1608_v23  ;;  %v1005_v22 = vld [vmem:[%s1879_s17 + $0xa0] sm:$0xff] }
  0x6d   : > { %v1612_v33 = vpop.eup %1611  ;;  %v962_v34 = vmin.f32 %v914_v51, 1.0  ;;  %v913_v36 = vmax.f32 %v865_v24, 0.0  ;;  %v766_v37 = vmul.f32 0.5, %v718_v25  ;;  %v717_v38 = vadd.f32 1.0, %v1610_v27 }
  0x6e   : > { %v1614_v39 = vpop.eup %1613  ;;  %v963_v40 = vmin.f32 %v915_v29, 1.0  ;;  %v911_v42 = vmax.f32 %v863_v30, 0.0  ;;  %v816_v43 = vmul.f32 1.2, %v768_v31  ;;  %v764_v44 = vmul.f32 0.5, %v716_v32 }
  0x6f   : > { %v1616_v45 = vpop.eup %1615  ;;  %v1058_v46 = vmul.f32 %v1010_v28, %v962_v34  ;;  %v961_v48 = vmin.f32 %v913_v36, 1.0  ;;  %v814_v50 = vmul.f32 1.2, %v766_v37  ;;  %v765_v52 = vmul.f32 0.5, %v717_v38  ;;  %v1003_v38 = vld [vmem:[%s1879_s17 + $0x90] sm:$0xff] }
  0x70   : > { %v1618_v53 = vpop.eup %1617  ;;  %v1059_v55 = vmul.f32 %v1011_v35, %v963_v40  ;;  %v959_v56 = vmin.f32 %v911_v42, 1.0  ;;  %v864_v57 = vadd.f32 -0.1, %v816_v43  ;;  %v812_v58 = vmul.f32 1.2, %v764_v44  ;;  %v1001_v44 = vld [vmem:[%s1879_s17 + $0x80] sm:$0xff] }
  0x71   : > { %1103 = vmatprep.subr.mxu0 %v1058_v46  ;;  %v1057_v59 = vmul.f32 %v1009_v41, %v961_v48  ;;  %v862_v61 = vadd.f32 -0.1, %v814_v50  ;;  %v813_v62 = vmul.f32 1.2, %v765_v52  ;;  %v715_v63 = vadd.f32 1.0, %v1612_v33  ;;  %v1002_v46 = vld [vmem:[%s1879_s17 + $0x88] sm:$0xff] }
  0x72   : > { %v1620_v0 = vpop.eup %1619  ;;  %1472 = vmatprep.subr.mxu1 %v1059_v55  ;;  %v1055_v2 = vmul.f32 %v1007_v49, %v959_v56  ;;  %v912_v3 = vmax.f32 %v864_v57, 0.0  ;;  %v860_v47 = vadd.f32 -0.1, %v812_v58  ;;  %v713_v4 = vadd.f32 1.0, %v1614_v39 }
  0x73   : > { %v1622_v5 = vpop.eup %1621  ;;  %1104 = vmatpush1.xpose.msra.mxu0 %v1057_v59  ;;  %1473 = vmatpush3.xpose.msra.mxu1 %v1059_v55  ;;  %v910_v7 = vmax.f32 %v862_v61, 0.0  ;;  %v861_v8 = vadd.f32 -0.1, %v813_v62  ;;  %v763_v9 = vmul.f32 0.5, %v715_v63  ;;  %v714_v54 = vadd.f32 1.0, %v1616_v45  ;;  %v416_v62 = vld [vmem:[%s1829_s14 + $0x38] sm:$0xff] }
  0x74   : > { %v1624_v10 = vpop.eup %1623  ;;  %1105 = vmatprep.subr.mxu0 %v1055_v2  ;;  %v960_v11 = vmin.f32 %v912_v3, 1.0  ;;  %v908_v13 = vmax.f32 %v860_v47, 0.0  ;;  %v761_v60 = vmul.f32 0.5, %v713_v4  ;;  %v712_v14 = vadd.f32 1.0, %v1618_v53  ;;  %v1000_v53 = vld [vmem:[%s1879_s17 + $0x78] sm:$0xff]  ;;  %v417_v4 = vld [vmem:[%s1829_s14 + $0x40] sm:$0xff] }
  0x75   : > { %v958_v15 = vmin.f32 %v910_v7, 1.0  ;;  %v909_v17 = vmax.f32 %v861_v8, 0.0  ;;  %v811_v1 = vmul.f32 1.2, %v763_v9  ;;  %v762_v18 = vmul.f32 0.5, %v714_v54  ;;  %v464_v63 = vld [vmem:[%s1823_s11 + $0x38] sm:$0xff] }
  0x76   : > { %v1626_v19 = vpop.eup %1625  ;;  %v1056_v20 = vmul.f32 %v1008_v6, %v960_v11  ;;  %v956_v21 = vmin.f32 %v908_v13, 1.0  ;;  %v809_v23 = vmul.f32 1.2, %v761_v60  ;;  %v760_v51 = vmul.f32 0.5, %v712_v14  ;;  %v465_v9 = vld [vmem:[%s1823_s11 + $0x40] sm:$0xff]  ;;  %v998_v11 = vld [vmem:[%s1879_s17 + $0x68] sm:$0xff] }
  0x77   : > { %v1628_v24 = vpop.eup %1627  ;;  %v1054_v25 = vmul.f32 %v1006_v12, %v958_v15  ;;  %v957_v27 = vmin.f32 %v909_v17, 1.0  ;;  %v859_v28 = vadd.f32 -0.1, %v811_v1  ;;  %v810_v29 = vmul.f32 1.2, %v762_v18  ;;  %v999_v12 = vld [vmem:[%s1879_s17 + $0x70] sm:$0xff] }
  0x78   : > { %1474 = vmatprep.subr.mxu1 %v1056_v20  ;;  %v1052_v30 = vmul.f32 %v1004_v16, %v956_v21  ;;  %v857_v31 = vadd.f32 -0.1, %v809_v23  ;;  %v808_v32 = vmul.f32 1.2, %v760_v51  ;;  %v710_v33 = vadd.f32 1.0, %v1620_v0  ;;  %v415_v1 = vld [vmem:[%s1829_s14 + $0x30] sm:$0xff] }
  0x79   : > { %1106 = vmatpush1.xpose.msra.mxu0 %v1054_v25  ;;  %1475 = vmatpush3.xpose.msra.mxu1 %v1056_v20  ;;  %v1053_v34 = vmul.f32 %v1005_v22, %v957_v27  ;;  %v907_v35 = vmax.f32 %v859_v28, 0.0  ;;  %v858_v36 = vadd.f32 -0.1, %v810_v29  ;;  %v711_v37 = vadd.f32 1.0, %v1622_v5  ;;  %v463_v18 = vld [vmem:[%s1823_s11 + $0x30] sm:$0xff]  ;;  %v997_v21 = vld [vmem:[%s1879_s17 + $0x60] sm:$0xff] }
  0x7a   : > { %1107 = vmatprep.subr.mxu0 %v1052_v30  ;;  %v905_v39 = vmax.f32 %v857_v31, 0.0  ;;  %v856_v40 = vadd.f32 -0.1, %v808_v32  ;;  %v758_v41 = vmul.f32 0.5, %v710_v33  ;;  %v709_v42 = vadd.f32 1.0, %v1624_v10  ;;  %v995_v22 = vld [vmem:[%s1879_s17 + $0x50] sm:$0xff] }
  0x7b   : > { %1476 = vmatprep.subr.mxu1 %v1053_v34  ;;  %v955_v43 = vmin.f32 %v907_v35, 1.0  ;;  %v906_v45 = vmax.f32 %v858_v36, 0.0  ;;  %v759_v48 = vmul.f32 0.5, %v711_v37  ;;  %v707_v49 = vadd.f32 1.0, %v1626_v19  ;;  %v413_v51 = vld [vmem:[%s1829_s14 + $0x20] sm:$0xff]  ;;  %v414_v33 = vld [vmem:[%s1829_s14 + $0x28] sm:$0xff] }
  0x7c   : > { %v953_v50 = vmin.f32 %v905_v39, 1.0  ;;  %v904_v52 = vmax.f32 %v856_v40, 0.0  ;;  %v806_v55 = vmul.f32 1.2, %v758_v41  ;;  %v757_v56 = vmul.f32 0.5, %v709_v42  ;;  %v461_v28 = vld [vmem:[%s1823_s11 + $0x20] sm:$0xff] }
  0x7d   : > { %v1051_v57 = vmul.f32 %v1003_v38, %v955_v43  ;;  %1477 = vmatpush3.xpose.msra.mxu1 %v1053_v34  ;;  %v954_v58 = vmin.f32 %v906_v45, 1.0  ;;  %v807_v59 = vmul.f32 1.2, %v759_v48  ;;  %v755_v61 = vmul.f32 0.5, %v707_v49  ;;  %v462_v34 = vld [vmem:[%s1823_s11 + $0x28] sm:$0xff]  ;;  %v412_v35 = vld [vmem:[%s1829_s14 + $0x18] sm:$0xff] }
  0x7e   : > { %v1049_v0 = vmul.f32 %v1001_v44, %v953_v50  ;;  %v952_v2 = vmin.f32 %v904_v52, 1.0  ;;  %v854_v3 = vadd.f32 -0.1, %v806_v55  ;;  %v805_v47 = vmul.f32 1.2, %v757_v56  ;;  %v460_v40 = vld [vmem:[%s1823_s11 + $0x18] sm:$0xff] }
  0x7f   : > { %1108 = vmatpush1.xpose.msra.mxu0 %v1051_v57  ;;  %v1050_v5 = vmul.f32 %v1002_v46, %v954_v58  ;;  %v855_v6 = vadd.f32 -0.1, %v807_v59  ;;  %v803_v7 = vmul.f32 1.2, %v755_v61  ;;  %v708_v8 = vadd.f32 1.0, %v1628_v24  ;;  %v410_v41 = vld [vmem:[%s1829_s14 + $0x8] sm:$0xff] }
  0x80   : > { %1109 = vmatprep.subr.mxu0 %v1049_v0  ;;  %v1048_v54 = vmul.f32 %v1000_v53, %v952_v2  ;;  %v902_v10 = vmax.f32 %v854_v3, 0.0  ;;  %v853_v13 = vadd.f32 -0.1, %v805_v47  ;;  %v610_v60 = vmul.f32 0.5, %v1957_v26  ;;  %v458_v46 = vld [vmem:[%s1823_s11 + $0x8] sm:$0xff]  ;;  %v411_v48 = vld [vmem:[%s1829_s14 + $0x10] sm:$0xff] }
  0x81   : > { %1478 = vmatprep.subr.mxu1 %v1050_v5  ;;  %v903_v14 = vmax.f32 %v855_v6, 0.0  ;;  %v851_v15 = vadd.f32 -0.1, %v803_v7  ;;  %v756_v16 = vmul.f32 0.5, %v708_v8  ;;  %v512_v17 = vadd.f32 %v464_v63, %v416_v62  ;;  %v459_v49 = vld [vmem:[%s1823_s11 + $0x10] sm:$0xff]  ;;  %v409_v55 = vld [vmem:[%s1829_s14] sm:$0xff] }
  0x82   : > { %1479 = vmatpush3.xpose.msra.mxu1 %v1050_v5  ;;  %v950_v19 = vmin.f32 %v902_v10, 1.0  ;;  %v901_v20 = vmax.f32 %v853_v13, 0.0  ;;  %1629 = vtanh.f32 %v610_v60  ;;  %v513_v23 = vadd.f32 %v465_v9, %v417_v4  ;;  %v457_v56 = vld [vmem:[%s1823_s11] sm:$0xff]  ;;  %v996_v57 = vld [vmem:[%s1879_s17 + $0x58] sm:$0xff]  ;;  %s2027_s11 = scalar_lea.hbm %s2081_s5, %s1437_s29  ;;  %s1653_s14 = sshll.u32 %s1727_s13, 4  ;;  %s1654_s14 = int_to_ptr.vmem [resolvable:$false] %s1653_s14 }
  0x83   : > { %1110 = vmatpush1.xpose.msra.mxu0 %v1048_v54  ;;  %v951_v26 = vmin.f32 %v903_v14, 1.0  ;;  %v899_v24 = vmax.f32 %v851_v15, 0.0  ;;  %v804_v25 = vmul.f32 1.2, %v756_v16  ;;  %v560_v27 = vmul.f32 1.5, %v512_v17  ;;  %s1655_s15 = scalar_lea.vmem %s1654_s14, 512 }
  0x84   : > { %v1046_v29 = vmul.f32 %v998_v11, %v950_v19  ;;  %v949_v30 = vmin.f32 %v901_v20, 1.0  ;;  %v561_v31 = vmul.f32 1.5, %v513_v23  ;;  %v511_v32 = vadd.f32 %v463_v18, %v415_v1 }
  0x85   : > { %v1047_v36 = vmul.f32 %v999_v12, %v951_v26  ;;  %v947_v37 = vmin.f32 %v899_v24, 1.0  ;;  %v852_v38 = vadd.f32 -0.1, %v804_v25  ;;  %v608_v39 = vmul.f32 0.5, %v560_v27  ;;  %v994_v24 = vld [vmem:[%s1879_s17 + $0x48] sm:$0xff] }
  0x86   : > { %1111 = vmatprep.subr.mxu0 %v1046_v29  ;;  %v1045_v42 = vmul.f32 %v997_v21, %v949_v30  ;;  %v609_v43 = vmul.f32 0.5, %v561_v31  ;;  %v559_v44 = vmul.f32 1.5, %v511_v32  ;;  %v509_v45 = vadd.f32 %v461_v28, %v413_v51 }
  0x87   : > { %1480 = vmatprep.subr.mxu1 %v1047_v36  ;;  %v1043_v50 = vmul.f32 %v995_v22, %v947_v37  ;;  %v900_v52 = vmax.f32 %v852_v38, 0.0  ;;  %1631 = vtanh.f32 %v608_v39  ;;  %v510_v53 = vadd.f32 %v462_v34, %v414_v33 }
  0x88   : > { %1112 = vmatpush1.xpose.msra.mxu0 %v1045_v42  ;;  %1481 = vmatpush3.xpose.msra.mxu1 %v1047_v36  ;;  %1633 = vtanh.f32 %v609_v43  ;;  %v607_v58 = vmul.f32 0.5, %v559_v44  ;;  %v557_v59 = vmul.f32 1.5, %v509_v45  ;;  %v508_v61 = vadd.f32 %v460_v40, %v412_v35  ;;  %v992_v42 = vld [vmem:[%s1879_s17 + $0x38] sm:$0xff] }
  0x89   : > { %1113 = vmatprep.subr.mxu0 %v1043_v50  ;;  %v948_v62 = vmin.f32 %v900_v52, 1.0  ;;  %v558_v63 = vmul.f32 1.5, %v510_v53  ;;  %v506_v0 = vadd.f32 %v458_v46, %v410_v41  ;;  %v507_v2 = vadd.f32 %v459_v49, %v411_v48  ;;  %v993_v53 = vld [vmem:[%s1879_s17 + $0x40] sm:$0xff] }
  0x8a   : > { %1635 = vtanh.f32 %v607_v58  ;;  %v605_v3 = vmul.f32 0.5, %v557_v59  ;;  %v556_v47 = vmul.f32 1.5, %v508_v61  ;;  %v505_v4 = vadd.f32 %v457_v56, %v409_v55 }
  0x8b   : > { %v1044_v5 = vmul.f32 %v996_v57, %v948_v62  ;;  %v606_v6 = vmul.f32 0.5, %v558_v63  ;;  %v554_v7 = vmul.f32 1.5, %v506_v0  ;;  %v555_v8 = vmul.f32 1.5, %v507_v2  ;;  %v991_v62 = vld [vmem:[%s1879_s17 + $0x30] sm:$0xff] }
  0x8c   : > { %1637 = vtanh.f32 %v605_v3  ;;  %v604_v9 = vmul.f32 0.5, %v556_v47  ;;  %v553_v54 = vmul.f32 1.5, %v505_v4 }
  0x8d   : > { %1482 = vmatprep.subr.mxu1 %v1044_v5  ;;  %1639 = vtanh.f32 %v606_v6  ;;  %v602_v10 = vmul.f32 0.5, %v554_v7  ;;  %v603_v11 = vmul.f32 0.5, %v555_v8  ;;  %v989_v8 = vld [vmem:[%s1879_s17 + $0x20] sm:$0xff] }
  0x8e   : > { %1483 = vmatpush3.xpose.msra.mxu1 %v1044_v5  ;;  %1641 = vtanh.f32 %v604_v9  ;;  %v601_v13 = vmul.f32 0.5, %v553_v54 }
  0x8f   : > { %v1630_v12 = vpop.eup %1629  ;;  %1643 = vtanh.f32 %v602_v10 }
  0x90   : > { %v706_v60 = vadd.f32 1.0, %v1630_v12  ;;  %1645 = vtanh.f32 %v603_v11 }
  0x91   : > { %1647 = vtanh.f32 %v601_v13 }
  0x92   : > { %v754_v14 = vmul.f32 0.5, %v706_v60 }
  0x94   : > { %v1632_v15 = vpop.eup %1631  ;;  %v802_v16 = vmul.f32 1.2, %v754_v14  ;;  %v990_v14 = vld [vmem:[%s1879_s17 + $0x28] sm:$0xff] }
  0x95   : > { %v1634_v17 = vpop.eup %1633  ;;  %v704_v1 = vadd.f32 1.0, %v1632_v15 }
  0x96   : > { %v850_v18 = vadd.f32 -0.1, %v802_v16  ;;  %v705_v19 = vadd.f32 1.0, %v1634_v17 }
  0x97   : > { %v1636_v20 = vpop.eup %1635  ;;  %v752_v21 = vmul.f32 0.5, %v704_v1 }
  0x98   : > { %v898_v22 = vmax.f32 %v850_v18, 0.0  ;;  %v753_v23 = vmul.f32 0.5, %v705_v19  ;;  %v703_v51 = vadd.f32 1.0, %v1636_v20  ;;  %v988_v20 = vld [vmem:[%s1879_s17 + $0x18] sm:$0xff] }
  0x99   : > { %v1638_v26 = vpop.eup %1637  ;;  %v800_v25 = vmul.f32 1.2, %v752_v21  ;;  %v986_v21 = vld [vmem:[%s1879_s17 + $0x8] sm:$0xff] }
  0x9a   : > { %v1640_v27 = vpop.eup %1639  ;;  %v946_v28 = vmin.f32 %v898_v22, 1.0  ;;  %v801_v29 = vmul.f32 1.2, %v753_v23  ;;  %v751_v30 = vmul.f32 0.5, %v703_v51  ;;  %v701_v31 = vadd.f32 1.0, %v1638_v26 }
  0x9b   : > { %v1642_v32 = vpop.eup %1641  ;;  %v848_v33 = vadd.f32 -0.1, %v800_v25  ;;  %v702_v34 = vadd.f32 1.0, %v1640_v27 }
  0x9c   : > { %v1644_v35 = vpop.eup %1643  ;;  %v1042_v36 = vmul.f32 %v994_v24, %v946_v28  ;;  %v849_v37 = vadd.f32 -0.1, %v801_v29  ;;  %v799_v38 = vmul.f32 1.2, %v751_v30  ;;  %v749_v39 = vmul.f32 0.5, %v701_v31  ;;  %v987_v24 = vld [vmem:[%s1879_s17 + $0x10] sm:$0xff] }
  0x9d   : > { %v1646_v40 = vpop.eup %1645  ;;  %v896_v41 = vmax.f32 %v848_v33, 0.0  ;;  %v750_v43 = vmul.f32 0.5, %v702_v34  ;;  %v700_v44 = vadd.f32 1.0, %v1642_v32  ;;  %v698_v45 = vadd.f32 1.0, %v1644_v35  ;;  %v985_v33 = vld [vmem:[%s1879_s17] sm:$0xff]  ;;  %v1088_v35 = vld [vmem:[%s2076_s0 + $0x28] sm:$0xff] }
  0x9e   : > { %1114 = vmatpush1.xpose.msra.mxu0 %v1042_v36  ;;  %v897_v46 = vmax.f32 %v849_v37, 0.0  ;;  %v847_v48 = vadd.f32 -0.1, %v799_v38  ;;  %v797_v49 = vmul.f32 1.2, %v749_v39  ;;  %v699_v50 = vadd.f32 1.0, %v1646_v40  ;;  %v1648_v58 = vpop.eup %1647 }
  0x9f   : > { %v944_v52 = vmin.f32 %v896_v41, 1.0  ;;  %v798_v55 = vmul.f32 1.2, %v750_v43  ;;  %v748_v56 = vmul.f32 0.5, %v700_v44  ;;  %v746_v57 = vmul.f32 0.5, %v698_v45  ;;  %v1083_v37 = vld [vmem:[%s2076_s0] sm:$0xff] }
  0xa0   : > { %v945_v59 = vmin.f32 %v897_v46, 1.0  ;;  %v895_v61 = vmax.f32 %v847_v48, 0.0  ;;  %v845_v63 = vadd.f32 -0.1, %v797_v49  ;;  %v747_v0 = vmul.f32 0.5, %v699_v50  ;;  %v1087_v38 = vld [vmem:[%s2076_s0 + $0x20] sm:$0xff] }
  0xa1   : > { %v1040_v2 = vmul.f32 %v992_v42, %v944_v52  ;;  %v846_v3 = vadd.f32 -0.1, %v798_v55  ;;  %v796_v47 = vmul.f32 1.2, %v748_v56  ;;  %v794_v4 = vmul.f32 1.2, %v746_v57 }
  0xa2   : > { %v1041_v5 = vmul.f32 %v993_v53, %v945_v59  ;;  %v943_v6 = vmin.f32 %v895_v61, 1.0  ;;  %v893_v7 = vmax.f32 %v845_v63, 0.0  ;;  %v795_v9 = vmul.f32 1.2, %v747_v0  ;;  %v1086_v39 = vld [vmem:[%s2076_s0 + $0x18] sm:$0xff]  ;;  %s1428_s17 = sshll.u32 %s348_s16, 4 }
  0xa3   : > { %1115 = vmatprep.subr.mxu0 %v1040_v2  ;;  %v894_v54 = vmax.f32 %v846_v3, 0.0  ;;  %v844_v10 = vadd.f32 -0.1, %v796_v47  ;;  %v842_v11 = vadd.f32 -0.1, %v794_v4  ;;  %v697_v12 = vadd.f32 1.0, %v1648_v58 }
  0xa4   : > { %1484 = vmatprep.subr.mxu1 %v1041_v5  ;;  %v1039_v13 = vmul.f32 %v991_v62, %v943_v6  ;;  %v941_v60 = vmin.f32 %v893_v7, 1.0  ;;  %v843_v15 = vadd.f32 -0.1, %v795_v9  ;;  %v1435_v45 = vld [vmem:[%s401_s27] ss:$0 sm:$0xff]  ;;  %s350_s7 = scalar_lea.vmem [#allocation2], %s1428_s17 }
  0xa5   : > { %1485 = vmatpush3.xpose.msra.mxu1 %v1041_v5  ;;  %v942_v16 = vmin.f32 %v894_v54, 1.0  ;;  %v892_v17 = vmax.f32 %v844_v10, 0.0  ;;  %v890_v1 = vmax.f32 %v842_v11, 0.0  ;;  %v745_v18 = vmul.f32 0.5, %v697_v12  ;;  %s1275_s8 = sshll.u32 %s350_s7, 4  ;;  %s2029_s8 = int_to_ptr.vmem [resolvable:$true] %s1275_s8 }
  0xa6   : > { %1116 = vmatpush1.xpose.msra.mxu0 %v1039_v13  ;;  %v1037_v19 = vmul.f32 %v989_v8, %v941_v60  ;;  %v891_v22 = vmax.f32 %v843_v15, 0.0  ;;  %s1649_s21 = scalar_lea.vmem %s2029_s8, 256  ;;  %p1656_p2 = scmp.lt.s32.totalorder %s2029_s8, %s1654_s14 }
  0xa7   : > { %v1038_v23 = vmul.f32 %v990_v14, %v942_v16  ;;  %v940_v51 = vmin.f32 %v892_v17, 1.0  ;;  %v938_v26 = vmin.f32 %v890_v1, 1.0  ;;  %v793_v25 = vmul.f32 1.2, %v745_v18  ;;  %p1650_p13 = scmp.ne.s32.totalorder %s2029_s8, %s1649_s21  ;;  %p1657_p3 = scmp.lt.s32.totalorder %s1655_s15, %s1649_s21 }
  0xa8   : > { %1117 = vmatprep.subr.mxu0 %v1037_v19  ;;  %v939_v27 = vmin.f32 %v891_v22, 1.0 }
  0xa9   : > { %1486 = vmatprep.subr.mxu1 %v1038_v23  ;;  %v1036_v28 = vmul.f32 %v988_v20, %v940_v51  ;;  %v1034_v29 = vmul.f32 %v986_v21, %v938_v26  ;;  %v841_v30 = vadd.f32 -0.1, %v793_v25  ;;  %p1651_p0 = pnand %p1650_p13, %p1801_p4  ;;  %p1658_p5 = por %p1657_p3, %p1656_p2 }
  0xaa   : > { %1487 = vmatpush3.xpose.msra.mxu1 %v1038_v23  ;;  %v1035_v31 = vmul.f32 %v987_v24, %v939_v27 }
  0xab   : > { %1118 = vmatpush1.xpose.msra.mxu0 %v1036_v28  ;;  %v889_v32 = vmax.f32 %v841_v30, 0.0  ;;  %p1652_p1 = pneg %p1651_p0 }
  0xac   : > { %1119 = vmatprep.subr.mxu0 %v1034_v29  ;;  %1488 = vmatprep.subr.mxu1 %v1035_v31 }
  0xad   : > { %v937_v34 = vmin.f32 %v889_v32, 1.0  ;;  %p1659_p6 = pnand %p1658_p5, %p1652_p1 }
  0xae   : > { %1489 = vmatpush3.xpose.msra.mxu1 %v1035_v31 }
  0xaf   : > { %v1033_v36 = vmul.f32 %v985_v33, %v937_v34 }
  0xb1   : > { %1120 = vmatpush1.xpose.msra.mxu0 %v1033_v36  ;;  %1491 = vmatmul.mubr.f32.vlgmr.msra.gmra.mxu1 %v1088_v35 }
  0xb4   : > { %1154 = vmatmul.mubr.f32.vlgmr.msra.gmra.mxu0 %v1083_v37 }
  0xb5   : > { %1158 = vmatprep.mubr.f32.mxu0 %v1087_v38 }
  0xb8   : > { %1159 = vmatmul.mubr.f32.gmra.mxu0 %v1086_v39 }
 0x171   : > { %v1492_v40 = vpop.f32.mrf.mxu1 }
 0x173   : > { %v1230_v41 = vpop.f32.mrf.mxu1 }
 0x174   : > { %v1155_v42 = vpop.f32.mrf.mxu0 }
 0x175   : > { %v1231_v43 = vadd.f32 %v1230_v41, %v1155_v42 }
 0x176   : > { %v1157_v44 = vpop.f32.mrf.mxu0 }
 0x177   : > { %v1255_v48 = vadd.f32 %v1435_v45, %v1231_v43 }
 0x178   : > { %v1160_v46 = vpop.f32.mrf.mxu0 }
 0x179   : > { %v1236_v49 = vadd.f32 %v1492_v40, %v1160_v46  ;;  %1257 = vst [vmem:[%s350_s7] sm:$0xff] %v1255_v48 }
 0x17a   : > { %v1162_v50 = vpop.f32.mrf.mxu0 }
 0x17b   : > { %v1256_v52 = vadd.f32 %v1435_v45, %v1236_v49 }
 0x17d   : > { %1258 = vst [vmem:[%s350_s7 + $0x8] sm:$0xff] %v1256_v52 }
 0x17e   : > { %1662 = shalt.err (!%p1659_p6)
}
 0x17f   : > { %s1663_s16 = scalar_lea.hbm %s2027_s11, 256  ;;  %s1667_s25 = scalar_lea.hbm %s2081_s5, 512 }
 0x180   : > { %p1664_p7 = scmp.ne.s32.totalorder %s2027_s11, %s1663_s16  ;;  %p1668_p11 = scmp.lt.s32.totalorder %s2027_s11, %s2081_s5 }
 0x181   : > { %p1669_p12 = scmp.lt.s32.totalorder %s1667_s25, %s1663_s16 }
 0x182   : > { %p1665_p9 = pnand %p1664_p7, %p1801_p4 }
 0x183   : > { %p1670_p13 = por %p1669_p12, %p1668_p11 }
 0x184   : > { %p1666_p10 = pneg %p1665_p9 }
 0x186   : > { %p1671_p0 = pnand %p1670_p13, %p1666_p10 }
 0x188   : > { %1674 = shalt.err (!%p1671_p0)
}
 0x189   : > { %s1728_s7 = smov 128   ;;  %s1729_s9 = smov 256  }
 0x18a   : > { %s1730_s10 = smov 8  }
 0x18b   : > { %1494 = dma.vmem_to_hbm [thread:$0]  (%p1801_p4), %s2029_s8, 256, %s2027_s11, %s2031_s12, %s1728_s7, %s1729_s9, %s1730_s10  }
 0x18c PF: > { %p1500_p1 = scmp.ge.s32.totalorder %s1725_s23, 2  ;;  %s1290_s21 = sand.u32 1, %s1705_s18  }
 0x18d   : > { %s1291_s13 = scalar_lea.sflag [#allocation3], %s1290_s21 }
 0x18e   : > { %p1497_p2 = pnand %p1500_p1, %p1808_p8 }
 0x190   : > { %p1498_p3 = pneg %p1497_p2 }
 0x192   : > { %1700 = dma.done.wait (%p1498_p3), %s1291_s13, 256  }
 0x193   : > { %1702 = vsyncadd (%p1498_p3), %s1291_s13, 4294967040  ;;  %s18_s23 = sadd.s32 1, %s1725_s23   ;;  %s2084_s18 = smov %s1709_s19 }
 0x194   : > { %p15_p5 = scmp.ge.s32.totalorder %s18_s23, 4   ;;  %s2085_s19 = smov %s1713_s20 }
 0x195   : > { %s2086_s20 = smov %s1814_s6  ;;  %s2087_s21 = smov %s1721_s22 }
 0x196   : > { %s2088_s22 = smov %s2090_s26  ;;  %17 = sbr.rel (!%p15_p5) target bundleno = 4 (0x4), region = 95 }
 0x19b   :  { %1296 = vsyncpa [#allocation3], 1 }
 0x19c   :  { %1298 = vsyncpa [#allocation3 + $0x1], 1 }

</bundles_post_ra>
